<compile_context>
chip_gen: v5e
topology: v5e:2x2
jax: 0.10.0
libtpu: 0.0.40
codegen_flags: <defaults>
</compile_context>

<pallas_src>
import functools

import jax
import jax.numpy as jnp
from jax.experimental import pallas as pl
from jax.experimental.pallas import tpu as pltpu


def _round_up(x, m):
    return ((x + m - 1) // m) * m


def _attention_pooling_kernel(q_ref, wh_ref, h_ref, o_ref, *, batch, block_b):
    # Upcast on load (h / w_h may arrive in bf16); all math below stays in f32.
    h = h_ref[...].astype(jnp.float32)        # (tb, L, H)
    q = q_ref[...].astype(jnp.float32)        # (1, H)
    w_h = wh_ref[...].astype(jnp.float32)     # (H, F_pad)

    if batch % block_b != 0:
        # Ragged tail block (h is NOT padded in the wrapper): zero the rows past B so
        # exp() never sees garbage.  Zero rows -> uniform softmax -> pooled = 0 ->
        # out = 0; those rows are never stored / are sliced off anyway.
        row = (pl.program_id(0) * block_b
               + jax.lax.broadcasted_iota(jnp.int32, (block_b, 1), 0))   # (tb, 1)
        h = jnp.where((row < batch)[:, :, None], h, 0.0)

    # scores[b, l] = sum_h q[h] * h[b, l, h]     (VPU mul + lane reduce)
    scores = jnp.sum(h * q[None, :, :], axis=-1)                # (tb, L)

    # Numerically-stable softmax over the layer axis (exact divide; EUP/VPU are
    # nowhere near saturated here, so no approximate reciprocal).
    m = jnp.max(scores, axis=-1, keepdims=True)                 # (tb, 1)
    e = jnp.exp(scores - m)                                     # (tb, L)
    attn = e / jnp.sum(e, axis=-1, keepdims=True)               # (tb, L)

    # pooled[b, h] = sum_l attn[b, l] * h[b, l, h]   (broadcast-mul + sublane reduce)
    pooled = jnp.sum(attn[:, :, None] * h, axis=1)              # (tb, H)

    # One MXU matmul for the whole batch tile.
    out = jnp.dot(pooled, w_h, preferred_element_type=jnp.float32)  # (tb, F_pad)
    o_ref[...] = out.astype(o_ref.dtype)


def _est_vmem_bytes(tb, L, H, F_pad, h_itemsize):
    """Per-step VMEM footprint: pipeline buffers + in-kernel f32 temporaries."""
    sub_in = 8 * max(1, 4 // h_itemsize)       # sublane packing: 8 (f32) / 16 (bf16)
    L_in = _round_up(L, sub_in)
    L_f32 = _round_up(L, 8)
    h_tile_in = tb * L_in * H * h_itemsize
    h_tile_f32 = tb * L_f32 * H * 4
    return (2 * h_tile_in                      # double-buffered streamed h tile
            + 3 * h_tile_f32                   # f32 upcast + two broadcast-mul temps
            + 2 * H * F_pad * 4                # w_h (constant block; count x2 to be safe)
            + 2 * 8 * H * 4                    # q (sublane-padded)
            + 2 * tb * F_pad * 4               # double-buffered output tile
            + tb * F_pad * 4)                  # matmul result / accumulator


def attention_pooling(h, q, w_h, *, block_b=None):
    """h: (B, L, H) f32/bf16, q: (1, H), w_h: (H, F) -> (B, F) f32 (eval mode)."""
    B, L, H = h.shape
    Hw, F = w_h.shape
    assert Hw == H and q.shape == (1, H)

    # Lane-dense output: pad hiddendim_fc to a multiple of 128 (zero columns), slice
    # back afterwards.  (Hoist this pad out of the per-call path if the weights are
    # reused across calls.)
    F_pad = _round_up(F, 128)
    if F_pad != F:
        w_h = jnp.pad(w_h, ((0, 0), (0, F_pad - F)))

    # Per-generation VMEM budget / preferred tile.
    try:
        vmem_cap = int(pltpu.get_tpu_info().vmem_capacity_bytes)
    except Exception:
        vmem_cap = 64 * 1024 * 1024                      # conservative (v7x-sized)
    if vmem_cap >= 128 * 1024 * 1024:                    # v5e / v6e
        budget = 100 * 1024 * 1024
        pref_tb = 512 if block_b is None else _round_up(block_b, 8)
        split_for_two_cores = False
    else:                                                # v7x: 64 MiB VMEM, 2 TCs
        budget = 52 * 1024 * 1024
        pref_tb = 256 if block_b is None else _round_up(block_b, 8)
        split_for_two_cores = True

    # Batch tile: multiple of 8 sublanes, never larger than the (rounded-up) batch.
    tb = min(pref_tb, _round_up(B, 8))
    if split_for_two_cores and B > 8:
        # Ensure >= 2 grid steps so dimension_semantics=("parallel",) can feed both TCs.
        tb = min(tb, _round_up(pl.cdiv(B, 2), 8))
    tb = max(8, tb - tb % 8)
    # Shrink until the tile (plus in-kernel temporaries) fits the VMEM budget.
    while tb > 8 and _est_vmem_bytes(tb, L, H, F_pad, h.dtype.itemsize) > budget:
        tb -= 8
    if tb >= 128:
        tb -= tb % 128                                   # full MXU M tiles when possible

    grid = (pl.cdiv(B, tb),)      # h is not padded; ragged tail handled in-kernel

    kernel = functools.partial(_attention_pooling_kernel, batch=B, block_b=tb)

    cost = pl.CostEstimate(
        flops=4 * B * L * H + 2 * B * H * F_pad,
        transcendentals=B * L,
        bytes_accessed=(B * L * H * h.dtype.itemsize
                        + H * F_pad * w_h.dtype.itemsize
                        + q.size * q.dtype.itemsize
                        + B * F_pad * 4),
    )

    out = pl.pallas_call(
        kernel,
        out_shape=jax.ShapeDtypeStruct((B, F_pad), jnp.float32),
        grid_spec=pltpu.PrefetchScalarGridSpec(
            num_scalar_prefetch=0,
            grid=grid,
            in_specs=[
                pl.BlockSpec((1, H), lambda b: (0, 0)),          # q   (shared)
                pl.BlockSpec((H, F_pad), lambda b: (0, 0)),      # w_h (shared)
                pl.BlockSpec((tb, L, H), lambda b: (b, 0, 0)),   # h   batch tile
            ],
            out_specs=pl.BlockSpec((tb, F_pad), lambda b: (b, 0)),
        ),
        compiler_params=pltpu.CompilerParams(
            dimension_semantics=("parallel",),
            vmem_limit_bytes=int(budget),
        ),
        cost_estimate=cost,
    )(q, w_h, h)

    return out[:, :F]


def attention_pooling_ref(h, q, w_h):
    # Pure-JAX reference mirroring the PyTorch code (eval mode).
    v = jnp.einsum("oh,blh->bl", q.astype(jnp.float32), h.astype(jnp.float32))
    v = jax.nn.softmax(v, axis=-1)                          # (B, L)
    pooled = jnp.einsum("bl,blh->bh", v, h.astype(jnp.float32))  # (B, H)
    return pooled @ w_h.astype(jnp.float32)                 # (B, F)


if __name__ == "__main__":
    # Small shapes consistent with the module (num_layers, hidden_size, hiddendim_fc).
    B, L, H, F = 2, 8, 32, 64

    key = jax.random.PRNGKey(0)
    k_q, k_w, k_h = jax.random.split(key, 3)

    # deterministic "normal(loc=0, scale=0.1)" style init
    q = (0.1 * jax.random.normal(k_q, (1, H))).astype(jnp.float32)
    w_h = (0.1 * jax.random.normal(k_w, (H, F))).astype(jnp.float32)
    h = jax.random.normal(k_h, (B, L, H)).astype(jnp.float32)

    out = jax.block_until_ready(attention_pooling(h, q, w_h))
    ref = attention_pooling_ref(h, q, w_h)
    assert out.shape == (B, F)
    assert jnp.allclose(out, ref, atol=1e-4, rtol=1e-4), "mismatch vs reference"

    # Second shape: batch not divisible by the tile, exercises the ragged-tail mask.
    B2 = 11
    h2 = jax.random.normal(jax.random.PRNGKey(1), (B2, L, H)).astype(jnp.float32)
    out2 = jax.block_until_ready(attention_pooling(h2, q, w_h))
    ref2 = attention_pooling_ref(h2, q, w_h)
    assert out2.shape == (B2, F)
    assert jnp.allclose(out2, ref2, atol=1e-4, rtol=1e-4), "mismatch vs reference (ragged)"

    print("KERNEL_OK")
</pallas_src>

<mosaic_0001>
module attributes {stable_mosaic.version = 11 : i64} {
  func.func @_attention_pooling_kernel(%arg0: i32, %arg1: memref<1x32xf32, #tpu.memory_space<vmem>>, %arg2: memref<32x128xf32, #tpu.memory_space<vmem>>, %arg3: memref<8x8x32xf32, #tpu.memory_space<vmem>>, %arg4: memref<8x128xf32, #tpu.memory_space<vmem>>) attributes {dimension_semantics = [#tpu.dimension_semantics<parallel>], iteration_bounds = array<i64: 1>, scalar_prefetch = 0 : i64, scratch_operands = 0 : i64, tpu.core_type = #tpu.core_type<tc>, window_params = [{pipeline_mode = #tpu.pipeline_mode<synchronous>, transform_indices = @transform_0, window_bounds = array<i64: 1, 32>}, {pipeline_mode = #tpu.pipeline_mode<synchronous>, transform_indices = @transform_1, window_bounds = array<i64: 32, 128>}, {transform_indices = @transform_2, window_bounds = array<i64: 8, 8, 32>}, {transform_indices = @transform_3, window_bounds = array<i64: 8, 128>}]} {
    %c0 = arith.constant 0 : index
    %c0_0 = arith.constant 0 : index
    %c0_1 = arith.constant 0 : index
    %0 = vector.load %arg3[%c0, %c0_0, %c0_1] : memref<8x8x32xf32, #tpu.memory_space<vmem>>, vector<8x8x32xf32>
    %c0_2 = arith.constant 0 : index
    %c0_3 = arith.constant 0 : index
    %1 = vector.load %arg1[%c0_2, %c0_3] : memref<1x32xf32, #tpu.memory_space<vmem>>, vector<1x32xf32>
    %c0_4 = arith.constant 0 : index
    %c0_5 = arith.constant 0 : index
    %2 = vector.load %arg2[%c0_4, %c0_5] : memref<32x128xf32, #tpu.memory_space<vmem>>, vector<32x128xf32>
    %c8_i32 = arith.constant 8 : i32
    %3 = arith.muli %arg0, %c8_i32 : i32
    %4 = tpu.iota {dimensions = array<i32: 0>} : vector<8x1xi32>
    %5 = vector.broadcast %3 : i32 to vector<8x1xi32>
    %6 = arith.addi %5, %4 : vector<8x1xi32>
    %c2_i32 = arith.constant 2 : i32
    %7 = vector.broadcast %c2_i32 : i32 to vector<8x1xi32>
    %8 = arith.cmpi slt, %6, %7 : vector<8x1xi32>
    %9 = vector.shape_cast %8 : vector<8x1xi1> to vector<8x1x1xi1>
    %cst = arith.constant 0.000000e+00 : f32
    %10 = vector.shape_cast %9 : vector<8x1x1xi1> to vector<8x1x1xi1>
    %11 = vector.broadcast %10 : vector<8x1x1xi1> to vector<8x8x32xi1>
    %12 = vector.broadcast %cst : f32 to vector<8x8x32xf32>
    %13 = arith.select %11, %0, %12 : vector<8x8x32xi1>, vector<8x8x32xf32>
    %14 = vector.shape_cast %1 : vector<1x32xf32> to vector<1x1x32xf32>
    %15 = vector.broadcast %14 : vector<1x1x32xf32> to vector<8x8x32xf32>
    %16 = arith.mulf %13, %15 : vector<8x8x32xf32>
    %cst_6 = arith.constant dense<0.000000e+00> : vector<8x8xf32>
    %17 = vector.multi_reduction <add>, %16, %cst_6 [2] : vector<8x8x32xf32> to vector<8x8xf32>
    %cst_7 = arith.constant dense<0xFF800000> : vector<8xf32>
    %18 = vector.multi_reduction <maximumf>, %17, %cst_7 [1] : vector<8x8xf32> to vector<8xf32>
    %19 = vector.shape_cast %18 : vector<8xf32> to vector<8x1xf32>
    %20 = vector.broadcast %19 : vector<8x1xf32> to vector<8x8xf32>
    %21 = arith.subf %17, %20 : vector<8x8xf32>
    %22 = math.exp %21 : vector<8x8xf32>
    %cst_8 = arith.constant dense<0.000000e+00> : vector<8xf32>
    %23 = vector.multi_reduction <add>, %22, %cst_8 [1] : vector<8x8xf32> to vector<8xf32>
    %24 = vector.shape_cast %23 : vector<8xf32> to vector<8x1xf32>
    %25 = vector.broadcast %24 : vector<8x1xf32> to vector<8x8xf32>
    %26 = arith.divf %22, %25 : vector<8x8xf32>
    %27 = vector.shape_cast %26 : vector<8x8xf32> to vector<8x8x1xf32>
    %28 = vector.broadcast %27 : vector<8x8x1xf32> to vector<8x8x32xf32>
    %29 = arith.mulf %28, %13 : vector<8x8x32xf32>
    %cst_9 = arith.constant dense<0.000000e+00> : vector<8x32xf32>
    %30 = vector.multi_reduction <add>, %29, %cst_9 [1] : vector<8x8x32xf32> to vector<8x32xf32>
    %cst_10 = arith.constant dense<0.000000e+00> : vector<8x128xf32>
    %31 = tpu.matmul %30, %2, %cst_10 {dimension_numbers = #tpu.dot_dimension_numbers<[1], [0], [0], [1], [0, 0, 1, 1], [], []>} : vector<8x32xf32>, vector<32x128xf32>, vector<8x128xf32> -> vector<8x128xf32>
    %c0_11 = arith.constant 0 : index
    %c0_12 = arith.constant 0 : index
    %32 = vector.load %arg4[%c0_11, %c0_12] : memref<8x128xf32, #tpu.memory_space<vmem>>, vector<8x128xf32>
    tpu.vector_store %arg4[%c0_11, %c0_12], %31 {strides = array<i32>} : memref<8x128xf32, #tpu.memory_space<vmem>>, vector<8x128xf32>,
    return
  }
  func.func @transform_0(%arg0: i32) -> (i32, i32) {
    %c0_i32 = arith.constant 0 : i32
    %c0_i32_0 = arith.constant 0 : i32
    %c0_i32_1 = arith.constant 0 : i32
    return %c0_i32, %c0_i32_0 : i32, i32
  }
  func.func @transform_1(%arg0: i32) -> (i32, i32) {
    %c0_i32 = arith.constant 0 : i32
    %c0_i32_0 = arith.constant 0 : i32
    %c0_i32_1 = arith.constant 0 : i32
    return %c0_i32, %c0_i32_0 : i32, i32
  }
  func.func @transform_2(%arg0: i32) -> (i32, i32, i32) {
    %c0_i32 = arith.constant 0 : i32
    %c0_i32_0 = arith.constant 0 : i32
    %c0_i32_1 = arith.constant 0 : i32
    return %arg0, %c0_i32, %c0_i32_0 : i32, i32, i32
  }
  func.func @transform_3(%arg0: i32) -> (i32, i32) {
    %c0_i32 = arith.constant 0 : i32
    %c0_i32_0 = arith.constant 0 : i32
    return %arg0, %c0_i32 : i32, i32
  }
}

</mosaic_0001>

<bundles_post_ra>
// kernel: tpu_custom_call.1
= control target key start
LH: loop header
LB: loop body
LE: loop exit
PB: predicated region body
PF: predicated region fallthrough
CT: control target
= control target key end

     0   :  { %8 = vsyncpa [#allocation3], 0  ;;  %s999_s0 = inlined_call_operand.hbm [shape: f32[1,32], index: 0, kind: input, shape index: {}]   ;;  %s1000_s1 = inlined_call_operand.hbm [shape: f32[32,128], index: 1, kind: input, shape index: {}]   ;;  %s1001_s2 = inlined_call_operand.hbm [shape: f32[2,8,32], index: 2, kind: input, shape index: {}]   ;;  %s1002_s3 = inlined_call_operand.hbm [shape: f32[2,128], index: 3, kind: output, shape index: {}]  }
   0x1   :  { %9 = vsyncpa [#allocation6], 0 }
   0x2   :  { %10 = vsyncpa [#allocation4], 0  ;;  %s16_s14 = sshll.u32 %s999_s0, 4  ;;  %s732_s15 = smov [#allocation2]   ;;  %s17_s14 = int_to_ptr.hbm [resolvable:$true] %s16_s14 }
   0x3   :  { %s18_s16 = sshll.u32 %s732_s15, 4  ;;  %s26_s19 = sshll.u32 %s1000_s1, 4  ;;  %s19_s16 = int_to_ptr.vmem [resolvable:$true] %s18_s16  ;;  %s27_s19 = int_to_ptr.hbm [resolvable:$true] %s26_s19 }
   0x4   :  { %21 = dma.hbm_to_vmem [thread:$0]  %s17_s14, 16, %s19_s16, [#allocation3]  }
   0x5   :  { %s733_s20 = smov [#allocation5]   ;;  %s734_s22 = smov 128  }
   0x6   :  { %s28_s21 = sshll.u32 %s733_s20, 4  ;;  %s735_s23 = smov 8   ;;  %s29_s21 = int_to_ptr.vmem [resolvable:$true] %s28_s21 }
   0x7   :  { %34 = dma.hbm_to_vmem [thread:$0]  %s27_s19, 512, %s29_s21, [#allocation6], %s734_s22, %s734_s22, %s735_s23  }
   0x8   :  { %38 = vsyncadd [#allocation6], 768  ;;  %s39_s0 = sshll.u32 %s1001_s2, 4  ;;  %s736_s26 = smov [#allocation7]   ;;  %s40_s0 = int_to_ptr.hbm [resolvable:$true] %s39_s0 }
   0x9   :  { %s41_s27 = sshll.u32 %s736_s26, 4  ;;  %s42_s27 = int_to_ptr.vmem [resolvable:$true] %s41_s27 }
   0xa   :  { %47 = dma.hbm_to_vmem [thread:$0]  %s40_s0, 256, %s42_s27, [#allocation6], %s734_s22, %s734_s22, %s735_s23  }
   0xb   :  { %726 = dma.done.wait [#allocation3], 16  }
   0xc   :  { %727 = vsyncadd [#allocation3], 4294967280 }
   0xd   :  { %728 = dma.done.wait [#allocation6], 1536  }
   0xe   :  { %729 = vsyncadd [#allocation6], 4294965760  ;;  %v74_v0 = vlaneseq  ;;  %v737_v1 = vmov 0   ;;  %vm131_vm1 = vcmask 261120   ;;  %v60_v8 = vld [vmem:[#allocation7] sm:$0xff]  ;;  %v62_v11 = vld [vmem:[#allocation7 + $0x10] sm:$0xff] }
   0xf   :  { %596 = vset.pattern.permute.xlu2 %v737_v1  ;;  %595 = vset.pattern.permute.xlu1 %v737_v1  ;;  %v597_v9 = vld [vmem:[#allocation2] ss:$0 sm:$0xff]  ;;  %v64_v12 = vld [vmem:[#allocation7 + $0x20] sm:$0xff]  ;;  %v61_v13 = vld [vmem:[#allocation7 + $0x8] sm:$0xff]  ;;  %vm174_vm10 = vcmask 1041409   ;;  %vm176_vm11 = vcmask 1042434  }
  0x10   :  { %v75_v2 = vshrl.u32 %v74_v0, 7  ;;  %594 = vset.pattern.permute.xlu0 %v737_v1  ;;  %v63_v17 = vld [vmem:[#allocation7 + $0x18] sm:$0xff]  ;;  %v65_v22 = vld [vmem:[#allocation7 + $0x28] sm:$0xff]  ;;  %v66_v34 = vld [vmem:[#allocation7 + $0x30] sm:$0xff]  ;;  %v804_v48 = vand.u32 127, %v74_v0  ;;  %vm178_vm12 = vcmask 1043459  }
  0x11   :  { %v67_v35 = vld [vmem:[#allocation7 + $0x38] sm:$0xff]  ;;  %vm180_vm13 = vcmask 1044484   ;;  %vm182_vm14 = vcmask 1045509   ;;  %vm1004_vm15 = vcmask 1046534  }
  0x12   :  { %vm78_vm0 = vcmp.lt.s32.totalorder %v75_v2, 2 }
  0x13   :  { %v79_v3 = vsel %vm78_vm0, 1, %v737_v1  ;;  %vm1003_vm0 = vcmask 1047559  }
  0x14   :  { %v80_v4 = vperm.slane %v79_v3, 0  ;;  %v82_v5 = vperm.slane %v79_v3, 2  ;;  %v84_v6 = vperm.slane %v79_v3, 4  ;;  %v81_v7 = vperm.slane %v79_v3, 1 }
  0x15   :  { %v83_v10 = vperm.slane %v79_v3, 3  ;;  %v85_v23 = vperm.slane %v79_v3, 5  ;;  %v86_v24 = vperm.slane %v79_v3, 6  ;;  %v87_v32 = vperm.slane %v79_v3, 7 }
  0x16   :  { %vm88_vm2 = vcmp.ne.s32.totalorder %v80_v4, 0  ;;  %vm90_vm3 = vcmp.ne.s32.totalorder %v82_v5, 0  ;;  %vm92_vm4 = vcmp.ne.s32.totalorder %v84_v6, 0  ;;  %vm89_vm5 = vcmp.ne.s32.totalorder %v81_v7, 0 }
  0x17   :  { %v771_v14 = vsel %vm88_vm2, %v60_v8, 0.0  ;;  %v773_v15 = vsel %vm90_vm3, %v62_v11, 0.0  ;;  %v775_v16 = vsel %vm92_vm4, %v64_v12, 0.0  ;;  %v780_v21 = vsel %vm89_vm5, %v61_v13, 0.0 }
  0x18   :  { %v123_v18 = vmul.f32 %v597_v9, %v771_v14  ;;  %v125_v19 = vmul.f32 %v597_v9, %v773_v15  ;;  %v127_v20 = vmul.f32 %v597_v9, %v775_v16  ;;  %vm91_vm6 = vcmp.ne.s32.totalorder %v83_v10, 0 }
  0x19   :  { %v785_v28 = vsel %vm91_vm6, %v63_v17, 0.0  ;;  %vm93_vm7 = vcmp.ne.s32.totalorder %v85_v23, 0  ;;  %v124_v29 = vmul.f32 %v597_v9, %v780_v21  ;;  %vm94_vm8 = vcmp.ne.s32.totalorder %v86_v24, 0 }
  0x1a   :  { %v132_v25 = vsel %vm131_vm1, %v123_v18, 0.0  ;;  %v138_v26 = vsel %vm131_vm1, %v125_v19, 0.0  ;;  %v144_v27 = vsel %vm131_vm1, %v127_v20, 0.0  ;;  %v126_v30 = vmul.f32 %v597_v9, %v785_v28 }
  0x1b   :  { %133 = vadd.xlane.f32.xlu0 %v132_v25  ;;  %139 = vadd.xlane.f32.xlu1 %v138_v26  ;;  %v789_v31 = vsel %vm93_vm7, %v65_v22, 0.0  ;;  %vm95_vm9 = vcmp.ne.s32.totalorder %v87_v32, 0  ;;  %v135_v36 = vsel %vm131_vm1, %v124_v29, 0.0  ;;  %v795_v39 = vsel %vm94_vm8, %v66_v34, 0.0 }
  0x1c   :  { %145 = vadd.xlane.f32.xlu2 %v144_v27  ;;  %v128_v33 = vmul.f32 %v597_v9, %v789_v31  ;;  %v141_v37 = vsel %vm131_vm1, %v126_v30, 0.0  ;;  %v797_v40 = vsel %vm95_vm9, %v67_v35, 0.0  ;;  %v129_v41 = vmul.f32 %v597_v9, %v795_v39 }
  0x1d   :  { %v130_v42 = vmul.f32 %v597_v9, %v797_v40  ;;  %vm189_vm2 = vcmask 64512  }
  0x1e   :  { %v147_v38 = vsel %vm131_vm1, %v128_v33, 0.0  ;;  %v150_v43 = vsel %vm131_vm1, %v129_v41, 0.0 }
  0x1f   :  { %v153_v44 = vsel %vm131_vm1, %v130_v42, 0.0 }
  0x23   :  { %136 = vadd.xlane.f32.xlu0 %v135_v36  ;;  %142 = vadd.xlane.f32.xlu1 %v141_v37 }
  0x24   :  { %148 = vadd.xlane.f32.xlu2 %v147_v38 }
  0x2b   :  { %151 = vadd.xlane.f32.xlu0 %v150_v43  ;;  %154 = vadd.xlane.f32.xlu1 %v153_v44 }
  0x8e   :  { %v134_v45 = vpop.xlane.xlu0 %133  ;;  %v140_v46 = vpop.xlane.xlu1 %139 }
  0x8f   :  { %v146_v47 = vpop.xlane.xlu2 %145  ;;  %v166_v51 = vperm.slane %v134_v45, %v804_v48  ;;  %v168_v54 = vperm.slane %v140_v46, %v804_v48 }
  0x90   :  { %v170_v58 = vperm.slane %v146_v47, %v804_v48 }
  0x96   :  { %v137_v49 = vpop.xlane.xlu0 %136  ;;  %v143_v50 = vpop.xlane.xlu1 %142 }
  0x97   :  { %v167_v52 = vperm.slane %v137_v49, %v804_v48  ;;  %v169_v53 = vperm.slane %v143_v50, %v804_v48  ;;  %v149_v56 = vpop.xlane.xlu2 %148 }
  0x98   :  { %v171_v60 = vperm.slane %v149_v56, %v804_v48 }
  0x99   :  { %v175_v55 = vsel %vm174_vm10, %v167_v52, %v166_v51 }
  0x9a   :  { %v177_v57 = vsel %vm176_vm11, %v168_v54, %v175_v55 }
  0x9b   :  { %v179_v59 = vsel %vm178_vm12, %v169_v53, %v177_v57 }
  0x9c   :  { %v181_v61 = vsel %vm180_vm13, %v170_v58, %v179_v59 }
  0x9d   :  { %v183_v2 = vsel %vm182_vm14, %v171_v60, %v181_v61 }
  0x9e   :  { %v152_v62 = vpop.xlane.xlu0 %151  ;;  %v155_v63 = vpop.xlane.xlu1 %154 }
  0x9f   :  { %v172_v0 = vperm.slane %v152_v62, %v804_v48  ;;  %v173_v1 = vperm.slane %v155_v63, %v804_v48 }
  0xa1   :  { %v185_v3 = vsel %vm1004_vm15, %v172_v0, %v183_v2 }
  0xa2   :  { %v187_v4 = vsel %vm1003_vm0, %v173_v1, %v185_v3 }
  0xa3   :  { %v190_v5 = vsel %vm189_vm2, %v187_v4, -inf }
  0xa4   :  { %191 = vmax.xlane.f32.xlu2 %v190_v5 }
 0x117   :  { %v192_v6 = vpop.xlane.xlu2 %191 }
 0x118   :  { %v196_v7 = vperm.slane %v192_v6, 2  ;;  %v195_v8 = vperm.slane %v192_v6, 1  ;;  %v194_v9 = vperm.slane %v192_v6, 0  ;;  %v197_v13 = vperm.slane %v192_v6, 3 }
 0x119   :  { %v198_v17 = vperm.slane %v192_v6, 4  ;;  %v201_v18 = vperm.slane %v192_v6, 7  ;;  %v199_v27 = vperm.slane %v192_v6, 5  ;;  %v200_v30 = vperm.slane %v192_v6, 6 }
 0x11a   :  { %v212_v10 = vsub.f32 %v140_v46, %v196_v7  ;;  %v211_v11 = vsub.f32 %v137_v49, %v195_v8  ;;  %v210_v12 = vsub.f32 %v134_v45, %v194_v9  ;;  %v213_v23 = vsub.f32 %v143_v50, %v197_v13 }
 0x11b   :  { %v214_v24 = vsub.f32 %v146_v47, %v198_v17  ;;  %v217_v25 = vsub.f32 %v155_v63, %v201_v18  ;;  %v215_v36 = vsub.f32 %v149_v56, %v199_v27  ;;  %v216_v37 = vsub.f32 %v152_v62, %v200_v30 }
 0x11c   :  { %v222_v19 = vmul.f32 1.442695, %v212_v10  ;;  %v220_v20 = vmul.f32 1.442695, %v211_v11  ;;  %v218_v22 = vmul.f32 1.442695, %v210_v12 }
 0x11d   :  { %v224_v26 = vmul.f32 1.442695, %v213_v23  ;;  %v226_v29 = vmul.f32 1.442695, %v214_v24  ;;  %v232_v33 = vmul.f32 1.442695, %v217_v25 }
 0x11e   :  { %598 = vpow2.f32 %v222_v19  ;;  %v228_v38 = vmul.f32 1.442695, %v215_v36  ;;  %v230_v41 = vmul.f32 1.442695, %v216_v37 }
 0x11f   :  { %600 = vpow2.f32 %v220_v20 }
 0x120   :  { %602 = vpow2.f32 %v218_v22 }
 0x121   :  { %604 = vpow2.f32 %v224_v26 }
 0x122   :  { %606 = vpow2.f32 %v226_v29 }
 0x123   :  { %608 = vpow2.f32 %v232_v33 }
 0x124   :  { %v822_v32 = vpop.eup %598  ;;  %610 = vpow2.f32 %v228_v38 }
 0x125   :  { %v824_v34 = vpop.eup %600  ;;  %249 = vperm.xlu2 %596, %v822_v32   ;;  %612 = vpow2.f32 %v230_v41 }
 0x126   :  { %v827_v35 = vpop.eup %602  ;;  %246 = vperm.xlu1 %595, %v824_v34  }
 0x127   :  { %243 = vperm.xlu0 %594, %v827_v35   ;;  %v831_v42 = vpop.eup %604 }
 0x128   :  { %v833_v43 = vpop.eup %606 }
 0x129   :  { %v836_v44 = vpop.eup %608 }
 0x12a   :  { %v840_v45 = vpop.eup %610 }
 0x12b   :  { %v842_v46 = vpop.eup %612 }
 0x12d   :  { %252 = vperm.xlu2 %596, %v831_v42  }
 0x12e   :  { %255 = vperm.xlu1 %595, %v833_v43  }
 0x12f   :  { %264 = vperm.xlu0 %594, %v836_v44  }
 0x135   :  { %258 = vperm.xlu2 %596, %v840_v45  }
 0x136   :  { %261 = vperm.xlu1 %595, %v842_v46  }
 0x17f   :  { %v250_v47 = vpop.permute.xlu2 %249 }
 0x180   :  { %v268_v56 = vperm.slane %v250_v47, %v804_v48 }
 0x187   :  { %v253_v51 = vpop.permute.xlu2 %252 }
 0x188   :  { %v269_v59 = vperm.slane %v253_v51, %v804_v48 }
 0x18f   :  { %v259_v60 = vpop.permute.xlu2 %258 }
 0x190   :  { %v271_v0 = vperm.slane %v259_v60, %v804_v48 }
 0x198   :  { %v247_v49 = vpop.permute.xlu1 %246 }
 0x199   :  { %v244_v50 = vpop.permute.xlu0 %243  ;;  %v267_v52 = vperm.slane %v247_v49, %v804_v48 }
 0x19a   :  { %v266_v53 = vperm.slane %v244_v50, %v804_v48 }
 0x19c   :  { %v274_v54 = vsel %vm174_vm10, %v267_v52, %v266_v53 }
 0x19d   :  { %v275_v57 = vsel %vm176_vm11, %v268_v56, %v274_v54 }
 0x19e   :  { %v276_v61 = vsel %vm178_vm12, %v269_v59, %v275_v57 }
 0x1a0   :  { %v256_v55 = vpop.permute.xlu1 %255 }
 0x1a1   :  { %v270_v58 = vperm.slane %v256_v55, %v804_v48  ;;  %v265_v63 = vpop.permute.xlu0 %264 }
 0x1a2   :  { %v273_v3 = vperm.slane %v265_v63, %v804_v48 }
 0x1a3   :  { %v277_v62 = vsel %vm180_vm13, %v270_v58, %v276_v61 }
 0x1a4   :  { %v278_v4 = vsel %vm182_vm14, %v271_v0, %v277_v62 }
 0x1a8   :  { %v262_v1 = vpop.permute.xlu1 %261 }
 0x1a9   :  { %v272_v2 = vperm.slane %v262_v1, %v804_v48 }
 0x1ab   :  { %v279_v5 = vsel %vm1004_vm15, %v272_v2, %v278_v4 }
 0x1ac   :  { %v280_v6 = vsel %vm1003_vm0, %v273_v3, %v279_v5 }
 0x1ad   :  { %v282_v7 = vsel %vm189_vm2, %v280_v6, 0.0 }
 0x1ae   :  { %283 = vadd.xlane.f32.xlu2 %v282_v7 }
 0x221   :  { %v284_v8 = vpop.xlane.xlu2 %283 }
 0x222   :  { %v286_v9 = vperm.slane %v284_v8, 0  ;;  %v287_v10 = vperm.slane %v284_v8, 1  ;;  %v862_v11 = vperm.slane %v284_v8, 2  ;;  %v864_v12 = vperm.slane %v284_v8, 3 }
 0x223   :  { %v866_v13 = vperm.slane %v284_v8, 4  ;;  %v868_v48 = vperm.slane %v284_v8, 5  ;;  %v874_v22 = vperm.slane %v284_v8, 7  ;;  %v876_v25 = vperm.slane %v284_v8, 6 }
 0x224   :  { %614 = vrcp.f32 %v286_v9  ;;  %v326_v17 = vand.u32 2147483647, %v287_v10  ;;  %v328_v18 = vand.u32 2147483648, %v287_v10  ;;  %v311_v19 = vand.u32 2147483647, %v286_v9 }
 0x225   :  { %616 = vrcp.f32 %v287_v10  ;;  %v313_v23 = vand.u32 2147483648, %v286_v9  ;;  %vm322_vm3 = vweird.f32 %v287_v10  ;;  %vm307_vm5 = vweird.f32 %v286_v9 }
 0x226   :  { %618 = vrcp.f32 %v862_v11  ;;  %vm880_vm4 = vcmp.eq.f32.partialorder %v326_v17, 8.507059e+37  ;;  %v329_v36 = vor.u32 1.1754944e-38, %v328_v18  ;;  %vm886_vm6 = vcmp.eq.f32.partialorder %v311_v19, 8.507059e+37 }
 0x227   :  { %620 = vrcp.f32 %v864_v12  ;;  %v314_v50 = vor.u32 1.1754944e-38, %v313_v23  ;;  %v358_v60 = vand.u32 2147483648, %v864_v12  ;;  %v343_v62 = vand.u32 2147483648, %v862_v11 }
 0x228   :  { %622 = vrcp.f32 %v866_v13  ;;  %v341_v17 = vand.u32 2147483647, %v862_v11  ;;  %v356_v19 = vand.u32 2147483647, %v864_v12  ;;  %v388_v30 = vand.u32 2147483648, %v868_v48 }
 0x229   :  { %624 = vrcp.f32 %v868_v48  ;;  %v373_v38 = vand.u32 2147483648, %v866_v13 }
 0x22a   :  { %v615_v20 = vpop.eup %614  ;;  %626 = vrcp.f32 %v874_v22 }
 0x22b   :  { %v617_v24 = vpop.eup %616  ;;  %v303_v26 = vmul.f32 %v615_v20, %v286_v9  ;;  %vm308_vm7 = vweird.f32 %v615_v20  ;;  %628 = vrcp.f32 %v876_v25 }
 0x22c   :  { %v878_v27 = vpop.eup %618  ;;  %v318_v29 = vmul.f32 %v617_v24, %v287_v10  ;;  %vm323_vm8 = vweird.f32 %v617_v24  ;;  %vm309_vm9 = vmor %vm307_vm5, %vm308_vm7  ;;  %vm352_vm5 = vweird.f32 %v864_v12  ;;  %vm357_vm7 = vcmp.eq.f32.partialorder %v356_v19, 8.507059e+37  ;;  %v71_v19 = vld [vmem:[#allocation5 + $0x10] sm:$0xff] }
 0x22d   :  { %v884_v33 = vpop.eup %620  ;;  %v304_v37 = vsub.f32 1.0, %v303_v26  ;;  %v333_v41 = vmul.f32 %v878_v27, %v862_v11  ;;  %vm338_vm2 = vweird.f32 %v878_v27  ;;  %vm324_vm0 = vmor %vm322_vm3, %vm323_vm8  ;;  %vm337_vm3 = vweird.f32 %v862_v11 }
 0x22e   :  { %v892_v47 = vpop.eup %622  ;;  %v319_v49 = vsub.f32 1.0, %v318_v29  ;;  %v348_v51 = vmul.f32 %v884_v33, %v864_v12  ;;  %vm353_vm15 = vweird.f32 %v884_v33  ;;  %v344_v11 = vor.u32 1.1754944e-38, %v343_v62 }
 0x22f   :  { %v897_v52 = vpop.eup %624  ;;  %v305_v53 = vmul.f32 %v615_v20, %v304_v37  ;;  %v334_v54 = vsub.f32 1.0, %v333_v41  ;;  %v363_v55 = vmul.f32 %v892_v47, %v866_v13  ;;  %v359_v26 = vor.u32 1.1754944e-38, %v358_v60 }
 0x230   :  { %v320_v56 = vmul.f32 %v617_v24, %v319_v49  ;;  %v349_v57 = vsub.f32 1.0, %v348_v51  ;;  %v378_v58 = vmul.f32 %v897_v52, %v868_v48  ;;  %v913_v4 = vpop.eup %626  ;;  %vm383_vm8 = vweird.f32 %v897_v52 }
 0x231   :  { %v306_v59 = vadd.f32 %v615_v20, %v305_v53  ;;  %v335_v61 = vmul.f32 %v878_v27, %v334_v54  ;;  %v364_v3 = vsub.f32 1.0, %v363_v55  ;;  %v932_v23 = vpop.eup %628  ;;  %v408_v12 = vmul.f32 %v913_v4, %v874_v22 }
 0x232   :  { %v321_v63 = vadd.f32 %v617_v24, %v320_v56  ;;  %v350_v0 = vmul.f32 %v884_v33, %v349_v57  ;;  %v379_v8 = vsub.f32 1.0, %v378_v58  ;;  %v386_v54 = vand.u32 2147483647, %v868_v48 }
 0x233   :  { %v310_v1 = vsel %vm309_vm9, %v615_v20, %v306_v59  ;;  %v336_v2 = vadd.f32 %v878_v27, %v335_v61  ;;  %v409_v41 = vsub.f32 1.0, %v408_v12  ;;  %vm367_vm9 = vweird.f32 %v866_v13 }
 0x234   :  { %v325_v5 = vsel %vm324_vm0, %v617_v24, %v321_v63  ;;  %v315_v6 = vsel %vm886_vm6, %v314_v50, %v310_v1  ;;  %v351_v7 = vadd.f32 %v884_v33, %v350_v0  ;;  %vm339_vm0 = vmor %vm337_vm3, %vm338_vm2  ;;  %v380_v24 = vmul.f32 %v897_v52, %v379_v8 }
 0x235   :  { %v330_v9 = vsel %vm880_vm4, %v329_v36, %v325_v5  ;;  %v316_v10 = vmul.f32 %v827_v35, %v315_v6  ;;  %vm354_vm6 = vmor %vm352_vm5, %vm353_vm15  ;;  %v340_v20 = vsel %vm339_vm0, %v878_v27, %v336_v2  ;;  %v365_v35 = vmul.f32 %v892_v47, %v364_v3 }
 0x236   :  { %v331_v18 = vmul.f32 %v824_v34, %v330_v9  ;;  %v355_v34 = vsel %vm354_vm6, %v884_v33, %v351_v7  ;;  %vm342_vm4 = vcmp.eq.f32.partialorder %v341_v17, 8.507059e+37  ;;  %vm368_vm15 = vweird.f32 %v892_v47 }
 0x237   :  { %424 = vperm.xlu1 %595, %v316_v10   ;;  %v345_v29 = vsel %vm342_vm4, %v344_v11, %v340_v20  ;;  %v360_v27 = vsel %vm357_vm7, %v359_v26, %v355_v34  ;;  %v366_v36 = vadd.f32 %v892_v47, %v365_v35  ;;  %v393_v33 = vmul.f32 %v932_v23, %v876_v25  ;;  %vm369_vm3 = vmor %vm367_vm9, %vm368_vm15  ;;  %v70_v35 = vld [vmem:[#allocation5 + $0x8] sm:$0xff]  ;;  %v69_v11 = vld [vmem:[#allocation5] sm:$0xff] }
 0x238   :  { %429 = vperm.xlu0 %594, %v331_v18   ;;  %v381_v37 = vadd.f32 %v897_v52, %v380_v24  ;;  %v346_v49 = vmul.f32 %v822_v32, %v345_v29  ;;  %v371_v50 = vand.u32 2147483647, %v866_v13  ;;  %v361_v53 = vmul.f32 %v831_v42, %v360_v27  ;;  %v72_v18 = vld [vmem:[#allocation5 + $0x18] sm:$0xff] }
 0x239   :  { %v394_v51 = vsub.f32 1.0, %v393_v33  ;;  %vm382_vm2 = vweird.f32 %v868_v48  ;;  %v370_v55 = vsel %vm369_vm3, %v892_v47, %v366_v36  ;;  %v374_v57 = vor.u32 1.1754944e-38, %v373_v38  ;;  %555 = vmatpush.msra.mxu0 %v72_v18 }
 0x23a   :  { %vm384_vm5 = vmor %vm382_vm2, %vm383_vm8  ;;  %v410_v13 = vmul.f32 %v913_v4, %v409_v41  ;;  %v389_v58 = vor.u32 1.1754944e-38, %v388_v30  ;;  %vm372_vm0 = vcmp.eq.f32.partialorder %v371_v50, 8.507059e+37  ;;  %vm387_vm6 = vcmp.eq.f32.partialorder %v386_v54, 8.507059e+37 }
 0x23b   :  { %v395_v56 = vmul.f32 %v932_v23, %v394_v51  ;;  %v385_v32 = vsel %vm384_vm5, %v897_v52, %v381_v37  ;;  %v375_v42 = vsel %vm372_vm0, %v374_v57, %v370_v55  ;;  %vm398_vm4 = vweird.f32 %v932_v23  ;;  %556 = vmatpush.msra.mxu0 %v71_v19 }
 0x23c   :  { %v390_v59 = vsel %vm387_vm6, %v389_v58, %v385_v32  ;;  %v411_v60 = vadd.f32 %v913_v4, %v410_v13  ;;  %vm413_vm7 = vweird.f32 %v913_v4  ;;  %v403_v47 = vand.u32 2147483648, %v876_v25 }
 0x23d   :  { %v396_v48 = vadd.f32 %v932_v23, %v395_v56  ;;  %v376_v52 = vmul.f32 %v833_v43, %v375_v42  ;;  %v418_v61 = vand.u32 2147483648, %v874_v22  ;;  %vm397_vm15 = vweird.f32 %v876_v25  ;;  %557 = vmatpush.msra.mxu0 %v70_v35 }
 0x23e   :  { %v401_v62 = vand.u32 2147483647, %v876_v25  ;;  %v391_v63 = vmul.f32 %v840_v45, %v390_v59  ;;  %vm412_vm8 = vweird.f32 %v874_v22  ;;  %v416_v0 = vand.u32 2147483647, %v874_v22  ;;  %vm399_vm9 = vmor %vm397_vm15, %vm398_vm4 }
 0x23f   :  { %434 = vperm.xlu1 %595, %v346_v49   ;;  %vm414_vm2 = vmor %vm412_vm8, %vm413_vm7  ;;  %v400_v1 = vsel %vm399_vm9, %v932_v23, %v396_v48  ;;  %v404_v2 = vor.u32 1.1754944e-38, %v403_v47  ;;  %v419_v3 = vor.u32 1.1754944e-38, %v418_v61  ;;  %558 = vmatpush.msra.mxu0 %v69_v11  ;;  %vm1010_vm0 = vcmask 1047559  }
 0x240   :  { %439 = vperm.xlu0 %594, %v361_v53   ;;  %v415_v43 = vsel %vm414_vm2, %v913_v4, %v411_v60  ;;  %vm402_vm3 = vcmp.eq.f32.partialorder %v401_v62, 8.507059e+37  ;;  %vm417_vm5 = vcmp.eq.f32.partialorder %v416_v0, 8.507059e+37 }
 0x241   :  { %v405_v5 = vsel %vm402_vm3, %v404_v2, %v400_v1  ;;  %v420_v25 = vsel %vm417_vm5, %v419_v3, %v415_v43 }
 0x242   :  { %v406_v45 = vmul.f32 %v842_v46, %v405_v5  ;;  %v421_v6 = vmul.f32 %v836_v44, %v420_v25 }
 0x247   :  { %444 = vperm.xlu1 %595, %v376_v52  }
 0x248   :  { %449 = vperm.xlu0 %594, %v391_v63  }
 0x24f   :  { %454 = vperm.xlu1 %595, %v406_v45  }
 0x250   :  { %459 = vperm.xlu0 %594, %v421_v6  }
 0x2a9   :  { %v425_v22 = vpop.permute.xlu1 %424 }
 0x2aa   :  { %v430_v7 = vpop.permute.xlu0 %429  ;;  %v462_v8 = vmul.f32 %v425_v22, %v771_v14 }
 0x2ab   :  { %v463_v9 = vmul.f32 %v430_v7, %v780_v21 }
 0x2ac   :  { %v470_v4 = vsel %vm131_vm1, %v462_v8, 0.0 }
 0x2ad   :  { %v477_v10 = vsel %vm131_vm1, %v463_v9, 0.0  ;;  %v471_v17 = vrot.slane %v470_v4, 4 }
 0x2ae   :  { %v478_v20 = vrot.slane %v477_v10, 4 }
 0x2af   :  { %v472_v34 = vadd.f32 %v471_v17, %v470_v4 }
 0x2b0   :  { %v479_v21 = vadd.f32 %v478_v20, %v477_v10 }
 0x2b1   :  { %v435_v46 = vpop.permute.xlu1 %434  ;;  %v473_v30 = vrot.slane %v472_v34, 2 }
 0x2b2   :  { %v440_v44 = vpop.permute.xlu0 %439  ;;  %v464_v23 = vmul.f32 %v435_v46, %v773_v15  ;;  %v480_v36 = vrot.slane %v479_v21, 2 }
 0x2b3   :  { %v465_v14 = vmul.f32 %v440_v44, %v785_v28  ;;  %v474_v28 = vadd.f32 %v473_v30, %v472_v34 }
 0x2b4   :  { %v484_v24 = vsel %vm131_vm1, %v464_v23, 0.0  ;;  %v481_v50 = vadd.f32 %v480_v36, %v479_v21 }
 0x2b5   :  { %v491_v12 = vsel %vm131_vm1, %v465_v14, 0.0  ;;  %v485_v26 = vrot.slane %v484_v24, 4  ;;  %v475_v57 = vrot.slane %v474_v28, 1 }
 0x2b6   :  { %v492_v29 = vrot.slane %v491_v12, 4  ;;  %v482_v58 = vrot.slane %v481_v50, 1 }
 0x2b7   :  { %v486_v27 = vadd.f32 %v485_v26, %v484_v24  ;;  %v476_v61 = vadd.f32 %v475_v57, %v474_v28 }
 0x2b8   :  { %v493_v33 = vadd.f32 %v492_v29, %v491_v12  ;;  %v483_v0 = vadd.f32 %v482_v58, %v481_v50 }
 0x2b9   :  { %v487_v37 = vrot.slane %v486_v27, 2  ;;  %v445_v15 = vpop.permute.xlu1 %444 }
 0x2ba   :  { %v450_v38 = vpop.permute.xlu0 %449  ;;  %v466_v41 = vmul.f32 %v445_v15, %v775_v16  ;;  %v494_v51 = vrot.slane %v493_v33, 2  ;;  %v534_v7 = vsel %vm174_vm10, %v483_v0, %v476_v61  ;;  %vm1009_vm10 = vcmask 1046534  }
 0x2bb   :  { %v467_v49 = vmul.f32 %v450_v38, %v789_v31  ;;  %v488_v54 = vadd.f32 %v487_v37, %v486_v27 }
 0x2bc   :  { %v498_v53 = vsel %vm131_vm1, %v466_v41, 0.0  ;;  %v495_v42 = vadd.f32 %v494_v51, %v493_v33 }
 0x2bd   :  { %v505_v55 = vsel %vm131_vm1, %v467_v49, 0.0  ;;  %v499_v56 = vrot.slane %v498_v53, 4  ;;  %v489_v48 = vrot.slane %v488_v54, 1 }
 0x2be   :  { %v506_v32 = vrot.slane %v505_v55, 4  ;;  %v496_v1 = vrot.slane %v495_v42, 1 }
 0x2bf   :  { %v500_v13 = vadd.f32 %v499_v56, %v498_v53  ;;  %v490_v3 = vadd.f32 %v489_v48, %v488_v54 }
 0x2c0   :  { %v507_v59 = vadd.f32 %v506_v32, %v505_v55  ;;  %v497_v8 = vadd.f32 %v496_v1, %v495_v42 }
 0x2c1   :  { %v501_v60 = vrot.slane %v500_v13, 2  ;;  %v455_v16 = vpop.permute.xlu1 %454  ;;  %v535_v4 = vsel %vm176_vm11, %v490_v3, %v534_v7 }
 0x2c2   :  { %v508_v47 = vrot.slane %v507_v59, 2  ;;  %v460_v52 = vpop.permute.xlu0 %459  ;;  %v468_v31 = vmul.f32 %v455_v16, %v795_v39  ;;  %v536_v46 = vsel %vm178_vm12, %v497_v8, %v535_v4 }
 0x2c3   :  { %v502_v62 = vadd.f32 %v501_v60, %v500_v13  ;;  %v469_v63 = vmul.f32 %v460_v52, %v797_v40 }
 0x2c4   :  { %v509_v43 = vadd.f32 %v508_v47, %v507_v59  ;;  %v512_v2 = vsel %vm131_vm1, %v468_v31, 0.0 }
 0x2c5   :  { %v503_v5 = vrot.slane %v502_v62, 1  ;;  %v519_v25 = vsel %vm131_vm1, %v469_v63, 0.0  ;;  %v513_v45 = vrot.slane %v512_v2, 4 }
 0x2c6   :  { %v520_v6 = vrot.slane %v519_v25, 4  ;;  %v510_v39 = vrot.slane %v509_v43, 1 }
 0x2c7   :  { %v514_v22 = vadd.f32 %v513_v45, %v512_v2  ;;  %v504_v40 = vadd.f32 %v503_v5, %v502_v62 }
 0x2c8   :  { %v521_v9 = vadd.f32 %v520_v6, %v519_v25  ;;  %v511_v19 = vadd.f32 %v510_v39, %v509_v43 }
 0x2c9   :  { %v515_v10 = vrot.slane %v514_v22, 2  ;;  %v537_v44 = vsel %vm180_vm13, %v504_v40, %v536_v46 }
 0x2ca   :  { %v522_v17 = vrot.slane %v521_v9, 2  ;;  %v538_v11 = vsel %vm182_vm14, %v511_v19, %v537_v44 }
 0x2cb   :  { %v516_v18 = vadd.f32 %v515_v10, %v514_v22 }
 0x2cc   :  { %v523_v20 = vadd.f32 %v522_v17, %v521_v9 }
 0x2cd   :  { %v517_v35 = vrot.slane %v516_v18, 1 }
 0x2ce   :  { %v524_v23 = vrot.slane %v523_v20, 1 }
 0x2cf   :  { %v518_v34 = vadd.f32 %v517_v35, %v516_v18 }
 0x2d0   :  { %v525_v14 = vadd.f32 %v524_v23, %v523_v20 }
 0x2d1   :  { %v539_v21 = vsel %vm1009_vm10, %v518_v34, %v538_v11 }
 0x2d2   :  { %v540_v24 = vsel %vm1010_vm0, %v525_v14, %v539_v21 }
 0x2d3   :  { %584 = vmatmul.msk.f32.vlgmr.msra.gmra.mxu0 %vm131_vm1, %v540_v24 }
 0x350   :  { %v560_v12 = vpop.f32.mrf.mxu0 }
 0x351   :  { %563 = vst [vmem:[#allocation8] sm:$0xff] %v560_v12 }
 0x352   :  { %567 = vsyncadd [#allocation4], 96  ;;  %s570_s28 = sshll.u32 %s1002_s3, 4  ;;  %s738_s29 = smov [#allocation8]   ;;  %s571_s28 = int_to_ptr.hbm [resolvable:$true] %s570_s28 }
 0x353   :  { %s568_s30 = sshll.u32 %s738_s29, 4  ;;  %s739_s4 = smov 32   ;;  %s569_s30 = int_to_ptr.vmem [resolvable:$true] %s568_s30 }
 0x354   :  { %s740_s5 = smov 2  }
 0x355   :  { %576 = dma.vmem_to_hbm [thread:$0]  %s569_s30, 32, %s571_s28, [#allocation4], %s739_s4, %s739_s4, %s740_s5  }
 0x356   :  { %730 = dma.done.wait [#allocation4], 128  }
 0x357   :  { %731 = vsyncadd [#allocation4], 4294967168 }
 0x358   :  { %581 = vsyncpa [#allocation3], 1 }
 0x359   :  { %582 = vsyncpa [#allocation6], 1 }
 0x35a   :  { %583 = vsyncpa [#allocation4], 1 }

</bundles_post_ra>
